<compile_context>
chip_gen: v7x
topology: tpu7x:2x2x1
jax: 0.10.0
libtpu: 0.0.40
codegen_flags: <defaults>
</compile_context>

<pallas_src>
import math
import functools
import jax
import jax.numpy as jnp
from jax.experimental import pallas as pl
from jax.experimental.pallas import tpu as pltpu

# Inter-kernel gate tensor dtype: bf16 halves the (T,B,4H) tensor written/read
# once per layer.  Recurrent matmul accumulation and h/c state stay f32.
GATE_DTYPE = jnp.bfloat16
# Inter-layer activation dtype (the encoder output itself is always f32).
ACT_DTYPE = jnp.bfloat16


def _cdiv(a, b):
    return -(-a // b)


def _round_up(a, b):
    return _cdiv(a, b) * b


def _next_pow2(n):
    p = 1
    while p < n:
        p *= 2
    return p


@functools.lru_cache(maxsize=None)
def _vmem_limit_bytes():
    """Generation-aware scoped-VMEM budget, with headroom for Mosaic scratch."""
    cap = 64 * 1024 * 1024
    try:
        info = pltpu.get_tpu_info()
        cap = int(getattr(info, "vmem_capacity_bytes", cap)) or cap
    except Exception:
        pass
    # ~51 MiB on 64 MiB parts (v7x), ~102 MiB on 128 MiB parts (v5e/v6e).
    return min(int(cap * 0.80), cap - 8 * 1024 * 1024)


def _sigmoid(x):
    # Exact identity; one EUP (tanh) push instead of exp + divide.
    return 0.5 * jnp.tanh(0.5 * x) + 0.5


def _gate_time_block(t_out, B, U, H4, f, tb_r, x_bytes):
    """Pick the gate-precompute time block so all live VMEM fits the budget."""
    budget = int(_vmem_limit_bytes() * 0.9)
    gate_bytes = jnp.dtype(GATE_DTYPE).itemsize
    fixed = f * U * H4 * 2 + H4 * 4                     # bf16 W_ih (1 buf) + f32 bias
    per_t = B * (H4 * (2 * gate_bytes + 4)              # out x2 buffers + f32 acc
                 + f * U * x_bytes * 2)                 # input x2 buffers
    tb = max(tb_r, (budget - fixed) // per_t) if budget > fixed else tb_r
    tb = min(tb, 256)                                   # diminishing returns past this
    tb = max(tb_r, (tb // tb_r) * tb_r)                 # keep a multiple of tb_r
    tb = min(tb, _round_up(t_out, tb_r))                # never exceed total work
    n_blk = _cdiv(t_out, tb)
    tb = _round_up(_cdiv(t_out, n_blk), tb_r)           # rebalance -> minimal padding
    return tb, n_blk


def gate_precompute(x, w_ih, b, *, factor, t_valid_in, t_out_pad, tb):
    """gates[t',b,:] = concat_j x[t'*f + j, b, :] @ W_ih[jU:(j+1)U] + (b_ih+b_hh).

    x:    (>= f*t_out_pad, B, U)   rows >= t_valid_in may be garbage/padding
    w_ih: (f*U, 4H) bf16, gate column order [i | f | g | o]
    b:    (1, 4H)   f32
    -> (t_out_pad, B, 4H) GATE_DTYPE
    """
    T_phys, B, U = x.shape
    H4 = w_ih.shape[1]
    f = int(factor)
    assert T_phys >= f * t_out_pad and w_ih.shape[0] == f * U
    assert t_out_pad % tb == 0
    n_blk = t_out_pad // tb
    mask_src = f > 1  # StackTime: source rows >= t_valid_in must read as zeros

    def kernel(x_ref, w_ref, b_ref, out_ref):
        m = pl.program_id(0)
        xb = x_ref[...].astype(jnp.bfloat16)              # (f*tb, B, U)
        xr = xb.reshape(tb, f, B, U) if f > 1 else None   # leading-dim split: free
        acc = None
        for j in range(f):                                # f is a small static int
            xj = xr[:, j] if f > 1 else xb                # (tb, B, U)
            if mask_src:
                t_src = (m * tb + jax.lax.broadcasted_iota(
                    jnp.int32, (tb, 1, 1), 0)) * f + j
                xj = jnp.where(t_src < t_valid_in, xj, jnp.zeros_like(xj))
            part = jnp.dot(xj.reshape(tb * B, U),
                           w_ref[j * U:(j + 1) * U, :],   # static, aligned slice
                           preferred_element_type=jnp.float32)
            # Fold the bias into the first accumulation (no zeros-init pass).
            acc = part + b_ref[...] if acc is None else acc + part
        out_ref[...] = acc.reshape(tb, B, H4).astype(out_ref.dtype)

    return pl.pallas_call(
        kernel,
        out_shape=jax.ShapeDtypeStruct((t_out_pad, B, H4), GATE_DTYPE),
        grid_spec=pltpu.PrefetchScalarGridSpec(
            num_scalar_prefetch=0,
            grid=(n_blk,),
            in_specs=[
                # StackTime fusion lives in this index_map: block m reads raw
                # timesteps [m*f*tb, (m+1)*f*tb).
                pl.BlockSpec((f * tb, B, U), lambda m: (m, 0, 0)),
                # Constant operands: fetched once, single-buffered to save VMEM.
                pl.BlockSpec((f * U, H4), lambda m: (0, 0),
                             pipeline_mode=pl.Buffered(1)),
                pl.BlockSpec((1, H4), lambda m: (0, 0),
                             pipeline_mode=pl.Buffered(1)),
            ],
            out_specs=pl.BlockSpec((tb, B, H4), lambda m: (m, 0, 0)),
        ),
        compiler_params=pltpu.CompilerParams(
            dimension_semantics=("parallel",),
            vmem_limit_bytes=_vmem_limit_bytes(),
        ),
    )(x, w_ih, b)


def lstm_recurrence(gates, w_hh, *, out_dtype, tb, transpose_out=False, unroll=2):
    """Serial LSTM recurrence over precomputed input gates.

    gates: (T_pad, B, 4H) GATE_DTYPE (= x @ W_ih + b_ih + b_hh)
    w_hh:  (H, 4H)        bf16
    -> (T_pad, B, H) out_dtype, or (B, T_pad, H) if transpose_out.
    """
    T, B, H4 = gates.shape
    H = H4 // 4
    assert T % tb == 0
    n_t = T // tb

    def kernel(g_ref, whh_ref, out_ref, h_scr, c_scr):
        @pl.when(pl.program_id(0) == 0)          # start of sequence: h0 = c0 = 0
        def _():
            h_scr[...] = jnp.zeros_like(h_scr)
            c_scr[...] = jnp.zeros_like(c_scr)

        w = whh_ref[...]                         # (H, 4H) bf16, hoisted

        def step(i, carry):
            g_t = g_ref[i].astype(jnp.float32) + jnp.dot(
                h_scr[...].astype(jnp.bfloat16), w,
                preferred_element_type=jnp.float32)
            # Gate slices are lane-aligned (free) whenever H % 128 == 0 (true at
            # realistic RNN-T sizes); the toy H=32 pays a small relayout.
            i_g = _sigmoid(g_t[:, 0 * H:1 * H])
            f_g = _sigmoid(g_t[:, 1 * H:2 * H])
            g_g = jnp.tanh(g_t[:, 2 * H:3 * H])
            o_g = _sigmoid(g_t[:, 3 * H:4 * H])
            c_new = f_g * c_scr[...] + i_g * g_g
            h_new = o_g * jnp.tanh(c_new)
            c_scr[...] = c_new
            h_scr[...] = h_new
            hv = h_new.astype(out_ref.dtype)
            if transpose_out:
                # Batch-major output: folds the final (T',B,H)->(B,T',H) transpose.
                out_ref[:, pl.ds(i, 1), :] = hv[:, None, :]
            else:
                out_ref[i] = hv
            return carry

        jax.lax.fori_loop(0, tb, step, 0, unroll=max(1, min(unroll, tb)))

    if transpose_out:
        out_shape = jax.ShapeDtypeStruct((B, T, H), out_dtype)
        out_spec = pl.BlockSpec((B, tb, H), lambda t: (0, t, 0))
    else:
        out_shape = jax.ShapeDtypeStruct((T, B, H), out_dtype)
        out_spec = pl.BlockSpec((tb, B, H), lambda t: (t, 0, 0))

    # NOTE: no batch split — on single-TC v5e/v6e it only doubles W_hh streaming.
    # TODO(synk): CORE_PARALLEL batch sharding of this grid on 2-TC v7x parts.
    return pl.pallas_call(
        kernel,
        out_shape=out_shape,
        grid_spec=pltpu.PrefetchScalarGridSpec(
            num_scalar_prefetch=0,
            grid=(n_t,),
            in_specs=[
                pl.BlockSpec((tb, B, H4), lambda t: (t, 0, 0)),
                pl.BlockSpec((H, H4), lambda t: (0, 0),
                             pipeline_mode=pl.Buffered(1)),
            ],
            out_specs=out_spec,
            scratch_shapes=[
                pltpu.VMEM((B, H), jnp.float32),   # h carry
                pltpu.VMEM((B, H), jnp.float32),   # c carry
            ],
        ),
        compiler_params=pltpu.CompilerParams(
            dimension_semantics=("arbitrary",),    # time is serial (carried state)
            vmem_limit_bytes=_vmem_limit_bytes(),
        ),
    )(gates, w_hh)


def lstm_layer(x, t_valid_in, w_ih, w_hh, b, *, factor=1,
               out_dtype=ACT_DTYPE, transpose_out=False):
    """One LSTM layer; factor>1 additionally fuses StackTime on the input.

    x: (T_phys, B, U) with logical length t_valid_in (rows beyond may be garbage).
    Returns (y, t_valid_out): y is (T_pad, B, H), or (B, T_pad, H) if transpose_out,
    with rows/cols beyond t_valid_out being padding.
    """
    T_phys, B, U = x.shape
    f = int(factor)
    H4 = w_ih.shape[1]
    t_out = _cdiv(t_valid_in, f)

    # Recurrence time block: small (serial path), power of two so the transposed
    # output block stays (8,128)-legal; modest unroll (deep unroll only spills).
    tb_r = min(16, _next_pow2(t_out))
    tb_g, n_blk = _gate_time_block(t_out, B, U, H4, f, tb_r,
                                   jnp.dtype(x.dtype).itemsize)
    t_out_pad = n_blk * tb_g

    # Physically pad the input (zeros) so every (f*tb_g) input block is in bounds;
    # usually a no-op because upstream layers already emit padded lengths.
    need = f * t_out_pad
    if need > T_phys:
        x = jnp.concatenate(
            [x, jnp.zeros((need - T_phys, B, U), x.dtype)], axis=0)

    gates = gate_precompute(x, w_ih, b, factor=f, t_valid_in=t_valid_in,
                            t_out_pad=t_out_pad, tb=tb_g)
    y = lstm_recurrence(gates, w_hh, out_dtype=out_dtype, tb=tb_r,
                        transpose_out=transpose_out)
    return y, t_out


def init_lstm_params(key, input_size, hidden_size, num_layers, forget_bias):
    """PyTorch-style init; applies forget_bias exactly like LstmDrop.__init__
    (bias_ih forget slice = forget_bias, bias_hh forget slice = 0).

    Weights are pre-transposed to (in, 4H)/(H, 4H) and cast to bf16 (MXU dtype);
    biases are combined (b_ih + b_hh) and kept f32.
    """
    params = []
    k = 1.0 / math.sqrt(hidden_size)
    for layer in range(num_layers):
        in_sz = input_size if layer == 0 else hidden_size
        key, k1, k2, k3, k4 = jax.random.split(key, 5)
        w_ih = jax.random.uniform(k1, (4 * hidden_size, in_sz), jnp.float32, -k, k)
        w_hh = jax.random.uniform(k2, (4 * hidden_size, hidden_size), jnp.float32, -k, k)
        b_ih = jax.random.uniform(k3, (4 * hidden_size,), jnp.float32, -k, k)
        b_hh = jax.random.uniform(k4, (4 * hidden_size,), jnp.float32, -k, k)
        if forget_bias is not None:
            b_ih = b_ih.at[hidden_size:2 * hidden_size].set(forget_bias)
            b_hh = b_hh.at[hidden_size:2 * hidden_size].set(0.0)
        params.append((
            w_ih.T.astype(jnp.bfloat16),
            w_hh.T.astype(jnp.bfloat16),
            (b_ih + b_hh)[None, :],  # f32, folded into the precomputed gates
        ))
    return params, key


def make_encoder_params(key, in_features, num_hidden, enc_pre_rnn_layers,
                        enc_post_rnn_layers, forget_bias, stack_time_factor):
    pre, key = init_lstm_params(key, in_features, num_hidden,
                                enc_pre_rnn_layers, forget_bias)
    post, key = init_lstm_params(key, stack_time_factor * num_hidden, num_hidden,
                                 enc_post_rnn_layers, forget_bias)
    return {"pre": pre, "post": post, "factor": stack_time_factor}


def encoder_forward(params, x_padded, x_lens):
    """Matches Encoder.forward: returns ((B, T', H) f32, updated x_lens)."""
    factor = params["factor"]
    x = x_padded                          # (T, B, F)
    t_valid = x.shape[0]

    # Pre-LSTM stack (inter-layer activations in bf16).
    for (w_ih, w_hh, b) in params["pre"]:
        x, t_valid = lstm_layer(x, t_valid, w_ih, w_hh, b,
                                factor=1, out_dtype=ACT_DTYPE)

    # StackTime: frame stacking is fused into the first post layer's input
    # projection; only the length update remains here.
    x_lens = jnp.ceil(x_lens.astype(jnp.float32) / factor).astype(jnp.int32)

    # Post-LSTM stack; last layer emits f32 directly in (B, T', H) layout.
    n_post = len(params["post"])
    for li, (w_ih, w_hh, b) in enumerate(params["post"]):
        last = li == n_post - 1
        x, t_valid = lstm_layer(
            x, t_valid, w_ih, w_hh, b,
            factor=factor if li == 0 else 1,
            out_dtype=jnp.float32 if last else ACT_DTYPE,
            transpose_out=last,
        )

    # x is (B, T_pad, H); drop any time padding (contiguous slice, no transpose).
    if x.shape[1] != t_valid:
        x = x[:, :t_valid, :]
    return x, x_lens


if __name__ == "__main__":
    # Small config consistent with the module.
    T, B = 8, 8
    in_features = 32
    num_hidden = 32
    enc_pre_rnn_layers = 2
    enc_post_rnn_layers = 2
    forget_bias = 1.0
    stack_time_factor = 2
    dropout = 0.0  # eval mode -> identity anyway
    # TODO(synk): training-mode dropout between LSTM layers is not implemented.

    key = jax.random.PRNGKey(0)
    kx, kl, kp = jax.random.split(key, 3)

    x_padded = jax.random.normal(kx, (T, B, in_features), jnp.float32)
    x_lens = jax.random.randint(kl, (B,), 1, T + 1, dtype=jnp.int32)

    params = make_encoder_params(kp, in_features, num_hidden, enc_pre_rnn_layers,
                                 enc_post_rnn_layers, forget_bias,
                                 stack_time_factor)

    out, out_lens = encoder_forward(params, x_padded, x_lens)
    out = jax.block_until_ready(out)
    out_lens = jax.block_until_ready(out_lens)

    expected_T = -(-T // stack_time_factor)
    assert out.shape == (B, expected_T, num_hidden), out.shape
    assert out.dtype == jnp.float32, out.dtype
    assert out_lens.shape == (B,), out_lens.shape
    assert bool(jnp.all(jnp.isfinite(out)))
    print("KERNEL_OK")
</pallas_src>

<mosaic_0001>
module attributes {stable_mosaic.version = 11 : i64} {
  func.func @kernel(%arg0: i32, %arg1: memref<8x8x32xf32, #tpu.memory_space<vmem>>, %arg2: memref<32x128xbf16, #tpu.memory_space<vmem>>, %arg3: memref<1x128xf32, #tpu.memory_space<vmem>>, %arg4: memref<8x8x128xbf16, #tpu.memory_space<vmem>>) attributes {dimension_semantics = [#tpu.dimension_semantics<parallel>], iteration_bounds = array<i64: 1>, scalar_prefetch = 0 : i64, scratch_operands = 0 : i64, tpu.core_type = #tpu.core_type<tc>, window_params = [{transform_indices = @transform_0, window_bounds = array<i64: 8, 8, 32>}, {pipeline_mode = #tpu.pipeline_mode<synchronous>, transform_indices = @transform_1, window_bounds = array<i64: 32, 128>}, {pipeline_mode = #tpu.pipeline_mode<synchronous>, transform_indices = @transform_2, window_bounds = array<i64: 1, 128>}, {transform_indices = @transform_3, window_bounds = array<i64: 8, 8, 128>}]} {
    %c0 = arith.constant 0 : index
    %c0_0 = arith.constant 0 : index
    %c0_1 = arith.constant 0 : index
    %0 = vector.load %arg1[%c0, %c0_0, %c0_1] : memref<8x8x32xf32, #tpu.memory_space<vmem>>, vector<8x8x32xf32>
    %1 = arith.truncf %0 : vector<8x8x32xf32> to vector<8x8x32xbf16>
    %2 = vector.shape_cast %1 : vector<8x8x32xbf16> to vector<64x32xbf16>
    %c0_2 = arith.constant 0 : index
    %c0_3 = arith.constant 0 : index
    %3 = vector.load %arg2[%c0_2, %c0_3] : memref<32x128xbf16, #tpu.memory_space<vmem>>, vector<32x128xbf16>
    %cst = arith.constant dense<0.000000e+00> : vector<64x128xf32>
    %4 = tpu.matmul %2, %3, %cst {dimension_numbers = #tpu.dot_dimension_numbers<[1], [0], [0], [1], [0, 0, 1, 1], [], []>} : vector<64x32xbf16>, vector<32x128xbf16>, vector<64x128xf32> -> vector<64x128xf32>
    %c0_4 = arith.constant 0 : index
    %c0_5 = arith.constant 0 : index
    %5 = vector.load %arg3[%c0_4, %c0_5] : memref<1x128xf32, #tpu.memory_space<vmem>>, vector<1x128xf32>
    %6 = vector.broadcast %5 : vector<1x128xf32> to vector<64x128xf32>
    %7 = arith.addf %4, %6 : vector<64x128xf32>
    %8 = vector.shape_cast %7 : vector<64x128xf32> to vector<8x8x128xf32>
    %9 = arith.truncf %8 : vector<8x8x128xf32> to vector<8x8x128xbf16>
    %c0_6 = arith.constant 0 : index
    %c0_7 = arith.constant 0 : index
    %c0_8 = arith.constant 0 : index
    %10 = vector.load %arg4[%c0_6, %c0_7, %c0_8] : memref<8x8x128xbf16, #tpu.memory_space<vmem>>, vector<8x8x128xbf16>
    tpu.vector_store %arg4[%c0_6, %c0_7, %c0_8], %9 {strides = array<i32>} : memref<8x8x128xbf16, #tpu.memory_space<vmem>>, vector<8x8x128xbf16>,
    return
  }
  func.func @transform_0(%arg0: i32) -> (i32, i32, i32) {
    %c0_i32 = arith.constant 0 : i32
    %c0_i32_0 = arith.constant 0 : i32
    %c0_i32_1 = arith.constant 0 : i32
    return %arg0, %c0_i32, %c0_i32_0 : i32, i32, i32
  }
  func.func @transform_1(%arg0: i32) -> (i32, i32) {
    %c0_i32 = arith.constant 0 : i32
    %c0_i32_0 = arith.constant 0 : i32
    %c0_i32_1 = arith.constant 0 : i32
    return %c0_i32, %c0_i32_0 : i32, i32
  }
  func.func @transform_2(%arg0: i32) -> (i32, i32) {
    %c0_i32 = arith.constant 0 : i32
    %c0_i32_0 = arith.constant 0 : i32
    %c0_i32_1 = arith.constant 0 : i32
    return %c0_i32, %c0_i32_0 : i32, i32
  }
  func.func @transform_3(%arg0: i32) -> (i32, i32, i32) {
    %c0_i32 = arith.constant 0 : i32
    %c0_i32_0 = arith.constant 0 : i32
    %c0_i32_1 = arith.constant 0 : i32
    return %arg0, %c0_i32, %c0_i32_0 : i32, i32, i32
  }
}

</mosaic_0001>

<bundles_post_ra>
// kernel: tpu_custom_call.1
= control target key start
LH: loop header
LB: loop body
LE: loop exit
PB: predicated region body
PF: predicated region fallthrough
CT: control target
= control target key end

     0   :  { %8 = vsyncpa [#allocation3], 0  ;;  %s432_s0 = inlined_call_operand.hbm [shape: f32[8,8,32], index: 0, kind: input, shape index: {}]   ;;  %s433_s1 = inlined_call_operand.hbm [shape: bf16[32,128], index: 1, kind: input, shape index: {}]   ;;  %s434_s2 = inlined_call_operand.vmem [shape: f32[1,128], index: 2, kind: input, shape index: {}]   ;;  %s435_s3 = inlined_call_operand.hbm [shape: bf16[8,8,128], index: 3, kind: output, shape index: {}]  }
   0x1   :  { %9 = vsyncpa [#allocation6], 0 }
   0x2   :  { %10 = vsyncpa [#allocation4], 0  ;;  %s356_s12 = smov [#allocation2]   ;;  %s284_s16 = scalar_lea.hbm %s432_s0, 1024 }
   0x3   :  { %s16_s13 = sshll.u32 %s356_s12, 4  ;;  %p285_p0 = scmp.ne.s32.totalorder %s432_s0, %s284_s16  ;;  %s17_s13 = int_to_ptr.vmem [resolvable:$true] %s16_s13 }
   0x4   :  { %p288_p1 = scmp.lt.u32.totalorder %s284_s16, %s432_s0 }
   0x6   :  { %p290_p2 = pnand %p288_p1, %p285_p0 }
   0x8   :  { %293 = shalt.err (!%p290_p2)
}
   0x9   :  { %s294_s21 = scalar_lea.vmem %s17_s13, 1024  ;;  %p299_p4 = scmp.lt.s32.totalorder %s17_s13, %s17_s13 }
   0xa   :  { %p295_p3 = scmp.ne.s32.totalorder %s17_s13, %s294_s21  ;;  %p300_p5 = scmp.lt.s32.totalorder %s294_s21, %s294_s21 }
   0xc   :  { %p301_p6 = por %p300_p5, %p299_p4 }
   0xe   :  { %p302_p7 = pnand %p301_p6, %p295_p3 }
  0x10   :  { %305 = shalt.err (!%p302_p7)
}
  0x11   :  { %s357_s22 = smov 128   ;;  %s358_s23 = smov 8  }
  0x12   :  { %22 = dma.hbm_to_vmem [thread:$0]  %s432_s0, 1024, %s17_s13, [#allocation3], %s357_s22, %s357_s22, %s358_s23  }
  0x13   :  { %s359_s26 = smov [#allocation5]   ;;  %s306_s30 = scalar_lea.hbm %s433_s1, 256 }
  0x14   :  { %s28_s27 = sshll.u32 %s359_s26, 4  ;;  %p307_p8 = scmp.ne.s32.totalorder %s433_s1, %s306_s30  ;;  %s29_s27 = int_to_ptr.vmem [resolvable:$true] %s28_s27 }
  0x15   :  { %p310_p9 = scmp.lt.u32.totalorder %s306_s30, %s433_s1 }
  0x17   :  { %p312_p10 = pnand %p310_p9, %p307_p8 }
  0x19   :  { %315 = shalt.err (!%p312_p10)
}
  0x1a   :  { %s316_s8 = scalar_lea.vmem %s29_s27, 256  ;;  %p321_p12 = scmp.lt.s32.totalorder %s29_s27, %s29_s27 }
  0x1b   :  { %p317_p11 = scmp.ne.s32.totalorder %s29_s27, %s316_s8  ;;  %p322_p13 = scmp.lt.s32.totalorder %s316_s8, %s316_s8 }
  0x1d   :  { %p323_p0 = por %p322_p13, %p321_p12 }
  0x1f   :  { %p324_p1 = pnand %p323_p0, %p317_p11 }
  0x21   :  { %327 = shalt.err (!%p324_p1)
}
  0x22   :  { %s360_s0 = smov 64   ;;  %s361_s9 = smov 4  }
  0x23   :  { %34 = dma.hbm_to_vmem [thread:$0]  %s433_s1, 256, %s29_s27, [#allocation6], %s360_s0, %s360_s0, %s361_s9  }
  0x24   :  { %350 = dma.done.wait [#allocation3], 1024  }
  0x25   :  { %351 = vsyncadd [#allocation3], 4294966272 }
  0x26   :  { %352 = dma.done.wait [#allocation6], 256  }
  0x27   :  { %353 = vsyncadd [#allocation6], 4294967040  ;;  %v282_v0 = vld [vmem:[#allocation5] sm:$0xff]   ;;  %v283_v1 = vld [vmem:[#allocation5 + $0x8] sm:$0xff]   ;;  %vm103_vm0 = vcmask 261120   ;;  %s362_s13 = smov [#allocation7]  }
  0x28   :  { %259 = vmatprep.subr.bf16.mxu0 %v282_v0  ;;  %271 = vmatprep.subr.bf16.mxu1 %v282_v0  ;;  %v44_v2 = vld [vmem:[#allocation2] sm:$0xff]  ;;  %v45_v3 = vld [vmem:[#allocation2 + $0x8] sm:$0xff]  ;;  %v46_v7 = vld [vmem:[#allocation2 + $0x10] sm:$0xff]  ;;  %s202_s14 = sshll.u32 %s362_s13, 4  ;;  %s203_s14 = int_to_ptr.vmem [resolvable:$true] %s202_s14 }
  0x29   :  { %v48_v4 = vld [vmem:[#allocation2 + $0x20] sm:$0xff]  ;;  %260 = vmatpush3.bf16.msra.mxu0 %v282_v0  ;;  %273 = vmatpush3.bf16.msra.mxu1 %v282_v0  ;;  %v226_v5 = vpack.c.bf16 %v45_v3, %v44_v2  ;;  %v49_v6 = vld [vmem:[#allocation2 + $0x28] sm:$0xff]  ;;  %v47_v8 = vld [vmem:[#allocation2 + $0x18] sm:$0xff]  ;;  %p333_p3 = scmp.lt.s32.totalorder %s203_s14, %s203_s14 }
  0x2a   :  { %261 = vmatprep.subr.bf16.mxu0 %v283_v1  ;;  %272 = vmatprep.subr.bf16.mxu1 %v283_v1  ;;  %v228_v9 = vpack.c.bf16 %v49_v6, %v48_v4  ;;  %v50_v10 = vld [vmem:[#allocation2 + $0x30] sm:$0xff]  ;;  %v51_v11 = vld [vmem:[#allocation2 + $0x38] sm:$0xff]  ;;  %v227_v12 = vpack.c.bf16 %v47_v8, %v46_v7  ;;  %v215_v15 = vld [vmem:[%s434_s2] ss:$0 sm:$0xff]  ;;  %s328_s2 = scalar_lea.vmem %s203_s14, 512 }
  0x2b   :  { %263 = vmatprep.mubr.msk.bf16.mxu0 %vm103_vm0, %v226_v5  ;;  %v229_v13 = vpack.c.bf16 %v51_v11, %v50_v10  ;;  %p329_p2 = scmp.ne.s32.totalorder %s203_s14, %s328_s2  ;;  %p334_p4 = scmp.lt.s32.totalorder %s328_s2, %s328_s2 }
  0x2c   :  { %267 = vmatprep.mubr.msk.bf16.mxu1 %vm103_vm0, %v228_v9 }
  0x2d   :  { %262 = vmatpush3.bf16.msra.mxu0 %v283_v1  ;;  %274 = vmatpush3.bf16.msra.mxu1 %v283_v1  ;;  %p335_p5 = por %p334_p4, %p333_p3 }
  0x2f   :  { %p336_p6 = pnand %p335_p5, %p329_p2 }
  0x30   :  { %264 = vmatmul.mubr.msk.bf16.vlgmr.msra.gmra.mrb[0].mxu0 %vm103_vm0, %v227_v12  ;;  %268 = vmatmul.mubr.msk.bf16.vlgmr.msra.gmra.mrb[0].mxu1 %vm103_vm0, %v229_v13 }
 0x103   :  { %v265_v14 = vpop.f32.mrb[0].mxu0  ;;  %v269_v16 = vpop.f32.mrb[0].mxu1 }
 0x104   :  { %v150_v17 = vpop.f32.mrb[1].mxu0  ;;  %v166_v18 = vpop.f32.mrb[1].mxu1  ;;  %v159_v21 = vadd.f32 %v265_v14, %v215_v15  ;;  %v175_v22 = vadd.f32 %v269_v16, %v215_v15 }
 0x105   :  { %v266_v19 = vpop.f32.mrb[2].mxu0  ;;  %v270_v20 = vpop.f32.mrb[2].mxu1  ;;  %v151_v27 = vadd.f32 %v215_v15, %v150_v17  ;;  %v167_v28 = vadd.f32 %v215_v15, %v166_v18 }
 0x106   :  { %v162_v23 = vadd.f32 %v266_v19, %v215_v15  ;;  %v178_v24 = vadd.f32 %v270_v20, %v215_v15  ;;  %v153_v25 = vpop.f32.mrb[3].mxu0  ;;  %v169_v26 = vpop.f32.mrb[3].mxu1 }
 0x107   :  { %v154_v29 = vadd.f32 %v215_v15, %v153_v25  ;;  %v170_v30 = vadd.f32 %v215_v15, %v169_v26 }
 0x108   :  { %v238_v31 = vpack.c.bf16 %v162_v23, %v159_v21  ;;  %v248_v32 = vpack.c.bf16 %v178_v24, %v175_v22 }
 0x109   :  { %v233_v33 = vpack.c.bf16 %v154_v29, %v151_v27  ;;  %v243_v34 = vpack.c.bf16 %v170_v30, %v167_v28 }
 0x10a   :  { %250 = vst [vmem:[#allocation7 + $0x8] sm:$0xff] %v238_v31   ;;  %252 = vst [vmem:[#allocation7 + $0x18] sm:$0xff] %v248_v32  }
 0x10b   :  { %234 = vst [vmem:[#allocation7] sm:$0xff] %v233_v33   ;;  %251 = vst [vmem:[#allocation7 + $0x10] sm:$0xff] %v243_v34  }
 0x10c   :  { %339 = shalt.err (!%p336_p6)
}
 0x10d   :  { %s340_s17 = scalar_lea.hbm %s435_s3, 512 }
 0x10e   :  { %p341_p7 = scmp.ne.s32.totalorder %s435_s3, %s340_s17  ;;  %p344_p8 = scmp.lt.u32.totalorder %s340_s17, %s435_s3 }
 0x110   :  { %p346_p9 = pnand %p344_p8, %p341_p7 }
 0x112   :  { %349 = shalt.err (!%p346_p9)
}
 0x113   :  { %208 = dma.vmem_to_hbm [thread:$0]  %s203_s14, 512, %s435_s3, [#allocation4], %s360_s0, %s360_s0, %s361_s9  }
 0x114   :  { %354 = dma.done.wait [#allocation4], 512  }
 0x115   :  { %355 = vsyncadd [#allocation4], 4294966784 }
 0x116   :  { %212 = vsyncpa [#allocation3], 1 }
 0x117   :  { %213 = vsyncpa [#allocation6], 1 }
 0x118   :  { %214 = vsyncpa [#allocation4], 1 }

</bundles_post_ra>
